<compile_context>
chip_gen: v6e
topology: v6e:2x2x1
jax: 0.10.0
libtpu: 0.0.40
codegen_flags: <defaults>
</compile_context>

<pallas_src>
import numpy as np
import jax
import jax.numpy as jnp
from jax.experimental import pallas as pl
from jax.experimental.pallas import tpu as pltpu


def _round_up(x, m):
    return (x + m - 1) // m * m


def _pick_vmem_limit():
    """Scoped-VMEM limit: ~3/4 of physical VMEM (64 MiB v7x, 128 MiB v5e/v6e)."""
    cap = 64 * 1024 * 1024           # conservative fallback (safe on every generation)
    try:
        cap = int(pltpu.get_tpu_info().vmem_capacity_bytes)
    except Exception:
        pass
    return int(min(cap * 3 // 4, 100 * 1024 * 1024))


def _make_conv1(K, L, im2col):
    """conv1 on a VMEM tile -> (tn*L, Cop) f32.  Shared by pass 1 and pass 2 so the
    BN1 statistics are computed from bit-identical values."""
    if im2col:
        # x_ref: (tn, L, K*Cin) host-built im2col (only used when K*Cin <= 128),
        # w_ref: (K*Cin, Cop) bf16.
        def conv1(x_ref, w_ref):
            tn, _, KC = x_ref.shape
            xc = x_ref[...].astype(jnp.bfloat16).reshape(tn * L, KC)
            return jnp.dot(xc, w_ref[...], preferred_element_type=jnp.float32)
    else:
        # x_ref: (tn, L+2P, Cin) raw padded input, w_ref: (K, Cin, Cop) bf16.
        # K shifted matmuls (used only when K*Cin > 128, i.e. Cin is already wide).
        def conv1(x_ref, w_ref):
            tn, _, Cin = x_ref.shape
            Cop = w_ref.shape[2]
            xp = x_ref[...].astype(jnp.bfloat16)
            acc = jnp.zeros((tn * L, Cop), jnp.float32)
            for k in range(K):                      # K static -> unrolled
                xs = xp[:, k:k + L, :].reshape(tn * L, Cin)
                acc = acc + jnp.dot(xs, w_ref[k], preferred_element_type=jnp.float32)
            return acc
    return conv1


# --------------------------------------------------------------------------
# Public wrapper (PyTorch-style NCL in / NCL out)
# --------------------------------------------------------------------------
def residual_block(x_ncl, params, kernel_size, padding):
    N, Cin, L = x_ncl.shape
    Cout = params["w1"].shape[0]
    K, P = int(kernel_size), int(padding)
    project = Cin != Cout
    eps = 1e-5
    f32, bf16 = jnp.float32, jnp.bfloat16

    Cop = _round_up(Cout, 128)       # lane-dense matmul-output channels
    KC = K * Cin
    Lp = L + 2 * P
    im2col1 = KC <= 128              # conv1 im2col fits one lane group -> single matmul

    # ---------------- layout prep (NCL -> NLC) ----------------
    x_nlc = jnp.transpose(x_ncl, (0, 2, 1)).astype(f32)          # (N, L, Cin)
    xpad = jnp.pad(x_nlc, ((0, 0), (P, P), (0, 0)))              # (N, Lp, Cin)
    if im2col1:
        x1 = jnp.concatenate([xpad[:, k:k + L, :] for k in range(K)], axis=-1)  # (N,L,KC)
    else:
        x1 = xpad                                                # (N, Lp, Cin)

    # Conv weights in bf16; biases dropped (they cancel exactly through BatchNorm).
    w1 = jnp.transpose(params["w1"].astype(f32), (2, 1, 0))      # (K, Cin, Cout)
    w1 = jnp.pad(w1, ((0, 0), (0, 0), (0, Cop - Cout)))          # (K, Cin, Cop)
    w1 = (w1.reshape(KC, Cop) if im2col1 else w1).astype(bf16)

    w2 = jnp.transpose(params["w2"].astype(f32), (2, 1, 0))      # (K, Cout, Cout)
    w2 = jnp.pad(w2, ((0, 0), (0, Cop - Cout), (0, Cop - Cout))) # (K, Cop, Cop)
    w2 = w2.reshape(K * Cop, Cop).astype(bf16)                   # conv2 im2col weight

    def pad_c(v):
        return jnp.pad(v.astype(f32), (0, Cop - Cout))

    g1, be1 = pad_c(params["g1"]), pad_c(params["be1"])
    g2, be2 = pad_c(params["g2"]), pad_c(params["be2"])

    # ---------------- tile sizing from VMEM budget ----------------
    vmem_limit = _pick_vmem_limit()
    # Per-sample working set of the heaviest pass (pass 2): double-buffered I/O tiles,
    # the f32 padded-activation scratch, and in-kernel im2col / f32 temporaries.
    per_sample = (
        2 * (x1.shape[1] * x1.shape[2] * 4)      # conv1 input tile (f32, 2 buffers)
        + 2 * (L * Cop * 2)                      # conv2 output tile (bf16, 2 buffers)
        + Lp * Cop * 4                           # padded BN1 scratch (f32)
        + L * Cop * (2 * K + 12)                 # in-VMEM im2col + f32 temporaries
    )
    w_bytes = 2 * 2 * (w1.size + w2.size + Cin * Cop)            # bf16, double-buffered
    budget = vmem_limit // 2 - w_bytes
    tn_cap = max(1, budget // per_sample)
    if N >= 2:
        tn_cap = min(tn_cap, N // 2)             # >= 2 grid steps: megacore + pipelining
    tn = 1
    for d in range(1, N + 1):
        if N % d == 0 and d <= tn_cap:
            tn = d
    nt = N // tn

    # ---------------- block specs ----------------
    x1_spec = pl.BlockSpec((tn,) + x1.shape[1:], lambda i: (i, 0, 0))
    xm_spec = pl.BlockSpec((tn, L, Cin), lambda i: (i, 0, 0))
    h2_spec = pl.BlockSpec((tn, L, Cop), lambda i: (i, 0, 0))
    out_spec = pl.BlockSpec((tn, L, Cout), lambda i: (i, 0, 0))
    stat_spec = pl.BlockSpec((1, 1, Cop), lambda i: (i, 0, 0))
    vec_spec = pl.BlockSpec((1, Cop), lambda i: (0, 0))
    w1_spec = pl.BlockSpec(w1.shape, lambda i: (0,) * w1.ndim)
    ws_spec = pl.BlockSpec((Cin, Cop), lambda i: (0, 0))
    w2_spec = pl.BlockSpec((K * Cop, Cop), lambda i: (0, 0))

    cparams = pltpu.CompilerParams(
        dimension_semantics=("parallel",),
        vmem_limit_bytes=vmem_limit,
    )

    stat = jax.ShapeDtypeStruct((nt, 1, Cop), f32)
    h2_sds = jax.ShapeDtypeStruct((N, L, Cop), bf16)
    out_sds = jax.ShapeDtypeStruct((N, L, Cout), f32)

    conv1_fn = _make_conv1(K, L, im2col1)

    # ---------------- pass 1: statistics only ----------------
    if project:
        ws = jnp.transpose(params["ws"][:, :, 0].astype(f32), (1, 0))   # (Cin, Cout)
        ws = jnp.pad(ws, ((0, 0), (0, Cop - Cout))).astype(bf16)        # (Cin, Cop)
        gs, bes = pad_c(params["gs"]), pad_c(params["bes"])

        def stats1_kernel(x1_ref, xm_ref, w1_ref, ws_ref,
                          s1_ref, q1_ref, ss_ref, qs_ref):
            tn_ = xm_ref.shape[0]
            h1 = conv1_fn(x1_ref, w1_ref)                               # (tn*L, Cop) f32
            s1_ref[...] = jnp.sum(h1, axis=0).reshape(1, 1, Cop)
            q1_ref[...] = jnp.sum(h1 * h1, axis=0).reshape(1, 1, Cop)
            xm = xm_ref[...].astype(bf16).reshape(tn_ * L, Cin)
            res = jnp.dot(xm, ws_ref[...], preferred_element_type=f32)  # 1x1 shortcut
            ss_ref[...] = jnp.sum(res, axis=0).reshape(1, 1, Cop)
            qs_ref[...] = jnp.sum(res * res, axis=0).reshape(1, 1, Cop)

        s1, q1, ss, qs = pl.pallas_call(
            stats1_kernel,
            grid=(nt,),
            in_specs=[x1_spec, xm_spec, w1_spec, ws_spec],
            out_specs=(stat_spec,) * 4,
            out_shape=(stat,) * 4,
            compiler_params=cparams,
        )(x1, x_nlc, w1, ws)
    else:
        def stats1_kernel(x1_ref, w1_ref, s1_ref, q1_ref):
            h1 = conv1_fn(x1_ref, w1_ref)
            s1_ref[...] = jnp.sum(h1, axis=0).reshape(1, 1, Cop)
            q1_ref[...] = jnp.sum(h1 * h1, axis=0).reshape(1, 1, Cop)

        s1, q1 = pl.pallas_call(
            stats1_kernel,
            grid=(nt,),
            in_specs=[x1_spec, w1_spec],
            out_specs=(stat_spec, stat_spec),
            out_shape=(stat, stat),
            compiler_params=cparams,
        )(x1, w1)

    cnt = float(N * L)

    def bn_affine(s, q, gamma, beta):
        mean = jnp.sum(s, axis=(0, 1)) / cnt
        # clamp: E[x^2] - mean^2 can cancel slightly negative in low precision
        var = jnp.maximum(jnp.sum(q, axis=(0, 1)) / cnt - mean * mean, 0.0)
        scale = gamma * jax.lax.rsqrt(var + eps)
        shift = beta - mean * scale
        return scale.reshape(1, Cop), shift.reshape(1, Cop)

    sc1, sh1 = bn_affine(s1, q1, g1, be1)

    # ---------------- pass 2: BN1 + ReLU + conv2 (+ BN2 partial stats) ----------------
    def stage2_kernel(x1_ref, w1_ref, sc1_ref, sh1_ref, w2_ref,
                      h2_ref, s2_ref, q2_ref, pad_ref):
        tn_ = h2_ref.shape[0]
        h1 = conv1_fn(x1_ref, w1_ref)                               # recompute conv1
        h1 = jnp.maximum(h1 * sc1_ref[...] + sh1_ref[...], 0.0)     # BN1 + ReLU (f32)

        # "same"-padded BN1 activation in a persistent VMEM scratch.  Pad strips are
        # re-zeroed every step (see header: program_id==0-once is unsafe on megacore).
        if P > 0:
            pad_ref[:, 0:P, :] = jnp.zeros((tn_, P, Cop), f32)
            pad_ref[:, L + P:L + 2 * P, :] = jnp.zeros((tn_, P, Cop), f32)
        pad_ref[:, P:P + L, :] = h1.reshape(tn_, L, Cop)

        # conv2 as ONE matmul over the in-VMEM im2col (lane-aligned Cop-wide slabs).
        xc2 = jnp.concatenate([pad_ref[:, k:k + L, :] for k in range(K)], axis=-1)
        xc2 = xc2.astype(bf16).reshape(tn_ * L, K * Cop)
        h2 = jnp.dot(xc2, w2_ref[...], preferred_element_type=f32)

        h2_ref[...] = h2.astype(h2_ref.dtype).reshape(tn_, L, Cop)   # bf16 store
        s2_ref[...] = jnp.sum(h2, axis=0).reshape(1, 1, Cop)
        q2_ref[...] = jnp.sum(h2 * h2, axis=0).reshape(1, 1, Cop)

    h2_raw, s2, q2 = pl.pallas_call(
        stage2_kernel,
        grid=(nt,),
        in_specs=[x1_spec, w1_spec, vec_spec, vec_spec, w2_spec],
        out_specs=(h2_spec, stat_spec, stat_spec),
        out_shape=(h2_sds, stat, stat),
        scratch_shapes=[pltpu.VMEM((tn, Lp, Cop), f32)],
        compiler_params=cparams,
    )(x1, w1, sc1, sh1, w2)

    sc2, sh2 = bn_affine(s2, q2, g2, be2)

    # ---------------- pass 3: BN2 + residual + ReLU ----------------
    if project:
        scs, shs = bn_affine(ss, qs, gs, bes)

        def stage3_kernel(h2_ref, xm_ref, ws_ref, sc2_ref, sh2_ref, scs_ref, shs_ref,
                          o_ref):
            tn_ = o_ref.shape[0]
            y = h2_ref[...].astype(f32).reshape(tn_ * L, Cop) * sc2_ref[...] + sh2_ref[...]
            xm = xm_ref[...].astype(bf16).reshape(tn_ * L, Cin)
            res = jnp.dot(xm, ws_ref[...], preferred_element_type=f32)  # recompute 1x1
            res = res * scs_ref[...] + shs_ref[...]
            out = jnp.maximum(y + res, 0.0)[:, :Cout]
            o_ref[...] = out.reshape(tn_, L, Cout)

        out_nlc = pl.pallas_call(
            stage3_kernel,
            grid=(nt,),
            in_specs=[h2_spec, xm_spec, ws_spec, vec_spec, vec_spec, vec_spec, vec_spec],
            out_specs=out_spec,
            out_shape=out_sds,
            compiler_params=cparams,
        )(h2_raw, x_nlc, ws, sc2, sh2, scs, shs)
    else:
        def stage3_kernel(h2_ref, xm_ref, sc2_ref, sh2_ref, o_ref):
            y = (h2_ref[...].astype(f32) * sc2_ref[...].reshape(1, 1, Cop)
                 + sh2_ref[...].reshape(1, 1, Cop))
            o_ref[...] = jnp.maximum(y[:, :, :Cout] + xm_ref[...], 0.0)

        out_nlc = pl.pallas_call(
            stage3_kernel,
            grid=(nt,),
            in_specs=[h2_spec, xm_spec, vec_spec, vec_spec],
            out_specs=out_spec,
            out_shape=out_sds,
            compiler_params=cparams,
        )(h2_raw, x_nlc, sc2, sh2)

    # back to NCL
    return jnp.transpose(out_nlc, (0, 2, 1))


# --------------------------------------------------------------------------
# Parameter init (mirrors the PyTorch module's parameter shapes) + reference
# --------------------------------------------------------------------------
def init_params(key, in_channels, out_channels, kernel_size):
    ks = jax.random.split(key, 6)

    def u(k, shape, fan_in):
        bound = 1.0 / np.sqrt(fan_in)
        return jax.random.uniform(k, shape, jnp.float32, -bound, bound)

    p = {
        "w1": u(ks[0], (out_channels, in_channels, kernel_size), in_channels * kernel_size),
        "b1": u(ks[1], (out_channels,), in_channels * kernel_size),
        "g1": jnp.ones((out_channels,), jnp.float32),
        "be1": jnp.zeros((out_channels,), jnp.float32),
        "w2": u(ks[2], (out_channels, out_channels, kernel_size), out_channels * kernel_size),
        "b2": u(ks[3], (out_channels,), out_channels * kernel_size),
        "g2": jnp.ones((out_channels,), jnp.float32),
        "be2": jnp.zeros((out_channels,), jnp.float32),
    }
    if in_channels != out_channels:
        p["ws"] = u(ks[4], (out_channels, in_channels, 1), in_channels)
        p["bs"] = u(ks[5], (out_channels,), in_channels)
        p["gs"] = jnp.ones((out_channels,), jnp.float32)
        p["bes"] = jnp.zeros((out_channels,), jnp.float32)
    return p


def reference(x_ncl, params, padding):
    """Pure-JAX (non-Pallas) reference matching the PyTorch forward."""
    hi = jax.lax.Precision.HIGHEST

    def conv1d(inp, w, b, pad):
        y = jax.lax.conv_general_dilated(
            inp, w, window_strides=(1,), padding=[(pad, pad)],
            dimension_numbers=("NCH", "OIH", "NCH"), precision=hi)
        return y + b[None, :, None]

    def bn(t, g, be, eps=1e-5):
        mean = jnp.mean(t, axis=(0, 2), keepdims=True)
        var = jnp.mean((t - mean) ** 2, axis=(0, 2), keepdims=True)
        return (t - mean) / jnp.sqrt(var + eps) * g[None, :, None] + be[None, :, None]

    if "ws" in params:
        res = bn(conv1d(x_ncl, params["ws"], params["bs"], 0), params["gs"], params["bes"])
    else:
        res = x_ncl
    h = jnp.maximum(bn(conv1d(x_ncl, params["w1"], params["b1"], padding),
                       params["g1"], params["be1"]), 0.0)
    h = bn(conv1d(h, params["w2"], params["b2"], padding), params["g2"], params["be2"])
    return jnp.maximum(h + res, 0.0)


if __name__ == "__main__":
    key = jax.random.PRNGKey(0)
    kx1, kp1, kx2, kp2 = jax.random.split(key, 4)

    # Matmuls run at native bf16 MXU precision and the conv2 output is stored in
    # bf16 (per the perf review); the reference runs at HIGHEST precision, so the
    # tolerance reflects the bf16 arithmetic/storage gap.
    TOL = 4e-2

    # Config 1: projection shortcut (in_channels != out_channels)
    N, Cin, Cout, L, K, P = 2, 4, 8, 16, 3, 1
    x = jax.random.normal(kx1, (N, Cin, L), jnp.float32)
    params = init_params(kp1, Cin, Cout, K)
    out = jax.block_until_ready(residual_block(x, params, K, P))
    assert out.shape == (N, Cout, L)
    np.testing.assert_allclose(np.asarray(out), np.asarray(reference(x, params, P)),
                               atol=TOL, rtol=TOL)

    # Config 2: identity shortcut (in_channels == out_channels)
    x2 = jax.random.normal(kx2, (2, 8, 16), jnp.float32)
    params2 = init_params(kp2, 8, 8, 3)
    out2 = jax.block_until_ready(residual_block(x2, params2, 3, 1))
    assert out2.shape == (2, 8, 16)
    np.testing.assert_allclose(np.asarray(out2), np.asarray(reference(x2, params2, 1)),
                               atol=TOL, rtol=TOL)

    print("KERNEL_OK")
</pallas_src>

<mosaic_0001>
module attributes {stable_mosaic.version = 11 : i64} {
  func.func @stats1_kernel(%arg0: i32, %arg1: memref<1x16x12xf32, #tpu.memory_space<vmem>>, %arg2: memref<1x16x4xf32, #tpu.memory_space<vmem>>, %arg3: memref<12x128xbf16, #tpu.memory_space<vmem>>, %arg4: memref<4x128xbf16, #tpu.memory_space<vmem>>, %arg5: memref<1x1x128xf32, #tpu.memory_space<vmem>>, %arg6: memref<1x1x128xf32, #tpu.memory_space<vmem>>, %arg7: memref<1x1x128xf32, #tpu.memory_space<vmem>>, %arg8: memref<1x1x128xf32, #tpu.memory_space<vmem>>) attributes {dimension_semantics = [#tpu.dimension_semantics<parallel>], iteration_bounds = array<i64: 2>, scalar_prefetch = 0 : i64, scratch_operands = 0 : i64, tpu.core_type = #tpu.core_type<tc>, window_params = [{transform_indices = @transform_0, window_bounds = array<i64: 1, 16, 12>}, {transform_indices = @transform_1, window_bounds = array<i64: 1, 16, 4>}, {pipeline_mode = #tpu.pipeline_mode<synchronous>, transform_indices = @transform_2, window_bounds = array<i64: 12, 128>}, {pipeline_mode = #tpu.pipeline_mode<synchronous>, transform_indices = @transform_3, window_bounds = array<i64: 4, 128>}, {transform_indices = @transform_4, window_bounds = array<i64: 1, 1, 128>}, {transform_indices = @transform_5, window_bounds = array<i64: 1, 1, 128>}, {transform_indices = @transform_6, window_bounds = array<i64: 1, 1, 128>}, {transform_indices = @transform_7, window_bounds = array<i64: 1, 1, 128>}]} {
    %c0 = arith.constant 0 : index
    %c0_0 = arith.constant 0 : index
    %c0_1 = arith.constant 0 : index
    %0 = vector.load %arg1[%c0, %c0_0, %c0_1] : memref<1x16x12xf32, #tpu.memory_space<vmem>>, vector<1x16x12xf32>
    %1 = arith.truncf %0 : vector<1x16x12xf32> to vector<1x16x12xbf16>
    %2 = vector.shape_cast %1 : vector<1x16x12xbf16> to vector<16x12xbf16>
    %c0_2 = arith.constant 0 : index
    %c0_3 = arith.constant 0 : index
    %3 = vector.load %arg3[%c0_2, %c0_3] : memref<12x128xbf16, #tpu.memory_space<vmem>>, vector<12x128xbf16>
    %cst = arith.constant dense<0.000000e+00> : vector<16x128xf32>
    %4 = tpu.matmul %2, %3, %cst {dimension_numbers = #tpu.dot_dimension_numbers<[1], [0], [0], [1], [0, 0, 1, 1], [], []>} : vector<16x12xbf16>, vector<12x128xbf16>, vector<16x128xf32> -> vector<16x128xf32>
    %cst_4 = arith.constant dense<0.000000e+00> : vector<128xf32>
    %5 = vector.multi_reduction <add>, %4, %cst_4 [0] : vector<16x128xf32> to vector<128xf32>
    %6 = vector.shape_cast %5 : vector<128xf32> to vector<1x1x128xf32>
    %c0_5 = arith.constant 0 : index
    %c0_6 = arith.constant 0 : index
    %c0_7 = arith.constant 0 : index
    %7 = vector.load %arg5[%c0_5, %c0_6, %c0_7] : memref<1x1x128xf32, #tpu.memory_space<vmem>>, vector<1x1x128xf32>
    tpu.vector_store %arg5[%c0_5, %c0_6, %c0_7], %6 {strides = array<i32>} : memref<1x1x128xf32, #tpu.memory_space<vmem>>, vector<1x1x128xf32>,
    %8 = arith.mulf %4, %4 : vector<16x128xf32>
    %cst_8 = arith.constant dense<0.000000e+00> : vector<128xf32>
    %9 = vector.multi_reduction <add>, %8, %cst_8 [0] : vector<16x128xf32> to vector<128xf32>
    %10 = vector.shape_cast %9 : vector<128xf32> to vector<1x1x128xf32>
    %c0_9 = arith.constant 0 : index
    %c0_10 = arith.constant 0 : index
    %c0_11 = arith.constant 0 : index
    %11 = vector.load %arg6[%c0_9, %c0_10, %c0_11] : memref<1x1x128xf32, #tpu.memory_space<vmem>>, vector<1x1x128xf32>
    tpu.vector_store %arg6[%c0_9, %c0_10, %c0_11], %10 {strides = array<i32>} : memref<1x1x128xf32, #tpu.memory_space<vmem>>, vector<1x1x128xf32>,
    %c0_12 = arith.constant 0 : index
    %c0_13 = arith.constant 0 : index
    %c0_14 = arith.constant 0 : index
    %12 = vector.load %arg2[%c0_12, %c0_13, %c0_14] : memref<1x16x4xf32, #tpu.memory_space<vmem>>, vector<1x16x4xf32>
    %13 = arith.truncf %12 : vector<1x16x4xf32> to vector<1x16x4xbf16>
    %14 = vector.shape_cast %13 : vector<1x16x4xbf16> to vector<16x4xbf16>
    %c0_15 = arith.constant 0 : index
    %c0_16 = arith.constant 0 : index
    %15 = vector.load %arg4[%c0_15, %c0_16] : memref<4x128xbf16, #tpu.memory_space<vmem>>, vector<4x128xbf16>
    %cst_17 = arith.constant dense<0.000000e+00> : vector<16x128xf32>
    %16 = tpu.matmul %14, %15, %cst_17 {dimension_numbers = #tpu.dot_dimension_numbers<[1], [0], [0], [1], [0, 0, 1, 1], [], []>} : vector<16x4xbf16>, vector<4x128xbf16>, vector<16x128xf32> -> vector<16x128xf32>
    %cst_18 = arith.constant dense<0.000000e+00> : vector<128xf32>
    %17 = vector.multi_reduction <add>, %16, %cst_18 [0] : vector<16x128xf32> to vector<128xf32>
    %18 = vector.shape_cast %17 : vector<128xf32> to vector<1x1x128xf32>
    %c0_19 = arith.constant 0 : index
    %c0_20 = arith.constant 0 : index
    %c0_21 = arith.constant 0 : index
    %19 = vector.load %arg7[%c0_19, %c0_20, %c0_21] : memref<1x1x128xf32, #tpu.memory_space<vmem>>, vector<1x1x128xf32>
    tpu.vector_store %arg7[%c0_19, %c0_20, %c0_21], %18 {strides = array<i32>} : memref<1x1x128xf32, #tpu.memory_space<vmem>>, vector<1x1x128xf32>,
    %20 = arith.mulf %16, %16 : vector<16x128xf32>
    %cst_22 = arith.constant dense<0.000000e+00> : vector<128xf32>
    %21 = vector.multi_reduction <add>, %20, %cst_22 [0] : vector<16x128xf32> to vector<128xf32>
    %22 = vector.shape_cast %21 : vector<128xf32> to vector<1x1x128xf32>
    %c0_23 = arith.constant 0 : index
    %c0_24 = arith.constant 0 : index
    %c0_25 = arith.constant 0 : index
    %23 = vector.load %arg8[%c0_23, %c0_24, %c0_25] : memref<1x1x128xf32, #tpu.memory_space<vmem>>, vector<1x1x128xf32>
    tpu.vector_store %arg8[%c0_23, %c0_24, %c0_25], %22 {strides = array<i32>} : memref<1x1x128xf32, #tpu.memory_space<vmem>>, vector<1x1x128xf32>,
    return
  }
  func.func @transform_0(%arg0: i32) -> (i32, i32, i32) {
    %c0_i32 = arith.constant 0 : i32
    %c0_i32_0 = arith.constant 0 : i32
    %c0_i32_1 = arith.constant 0 : i32
    return %arg0, %c0_i32, %c0_i32_0 : i32, i32, i32
  }
  func.func @transform_1(%arg0: i32) -> (i32, i32, i32) {
    %c0_i32 = arith.constant 0 : i32
    %c0_i32_0 = arith.constant 0 : i32
    %c0_i32_1 = arith.constant 0 : i32
    return %arg0, %c0_i32, %c0_i32_0 : i32, i32, i32
  }
  func.func @transform_2(%arg0: i32) -> (i32, i32) {
    %c0_i32 = arith.constant 0 : i32
    %c0_i32_0 = arith.constant 0 : i32
    %c0_i32_1 = arith.constant 0 : i32
    return %c0_i32, %c0_i32_0 : i32, i32
  }
  func.func @transform_3(%arg0: i32) -> (i32, i32) {
    %c0_i32 = arith.constant 0 : i32
    %c0_i32_0 = arith.constant 0 : i32
    %c0_i32_1 = arith.constant 0 : i32
    return %c0_i32, %c0_i32_0 : i32, i32
  }
  func.func @transform_4(%arg0: i32) -> (i32, i32, i32) {
    %c0_i32 = arith.constant 0 : i32
    %c0_i32_0 = arith.constant 0 : i32
    %c0_i32_1 = arith.constant 0 : i32
    return %arg0, %c0_i32, %c0_i32_0 : i32, i32, i32
  }
  func.func @transform_5(%arg0: i32) -> (i32, i32, i32) {
    %c0_i32 = arith.constant 0 : i32
    %c0_i32_0 = arith.constant 0 : i32
    %c0_i32_1 = arith.constant 0 : i32
    return %arg0, %c0_i32, %c0_i32_0 : i32, i32, i32
  }
  func.func @transform_6(%arg0: i32) -> (i32, i32, i32) {
    %c0_i32 = arith.constant 0 : i32
    %c0_i32_0 = arith.constant 0 : i32
    %c0_i32_1 = arith.constant 0 : i32
    return %arg0, %c0_i32, %c0_i32_0 : i32, i32, i32
  }
  func.func @transform_7(%arg0: i32) -> (i32, i32, i32) {
    %c0_i32 = arith.constant 0 : i32
    %c0_i32_0 = arith.constant 0 : i32
    %c0_i32_1 = arith.constant 0 : i32
    return %arg0, %c0_i32, %c0_i32_0 : i32, i32, i32
  }
}

</mosaic_0001>

<bundles_post_ra>
// kernel: tpu_custom_call.1
= control target key start
LH: loop header
LB: loop body
LE: loop exit
PB: predicated region body
PF: predicated region fallthrough
CT: control target
= control target key end

     0   :  { %s1197_s0 = inlined_call_operand.vmem [shape: f32[2,16,12], index: 0, kind: input, shape index: {}]   ;;  %s1198_s1 = inlined_call_operand.vmem [shape: f32[2,16,4], index: 1, kind: input, shape index: {}]   ;;  %s1199_s2 = inlined_call_operand.vmem [shape: bf16[12,128], index: 2, kind: input, shape index: {}]   ;;  %s1200_s3 = inlined_call_operand.vmem [shape: bf16[4,128], index: 3, kind: input, shape index: {}]   ;;  %s1201_s4 = inlined_call_operand.hbm [shape: f32[2,1,128], index: 4, kind: output, shape index: {0}]   ;;  %s1202_s5 = inlined_call_operand.hbm [shape: f32[2,1,128], index: 5, kind: output, shape index: {1}]   ;;  %s1203_s6 = inlined_call_operand.hbm [shape: f32[2,1,128], index: 6, kind: output, shape index: {2}]   ;;  %s1204_s7 = inlined_call_operand.hbm [shape: f32[2,1,128], index: 7, kind: output, shape index: {3}]  }
   0x1   :  { %1209 = sst [smem:[#allocation13_spill]] %s1197_s0 }
   0x2   :  { %1210 = sst [smem:[#allocation14_spill]] %s1198_s1 }
   0x3   :  { %1211 = sst [smem:[#allocation15_spill]] %s1199_s2 }
   0x4   :  { %1212 = sst [smem:[#allocation16_spill]] %s1200_s3 }
   0x5   :  { %13 = vsyncpa [#allocation3], 0 }
   0x6   :  { %15 = vsyncpa [#allocation3 + $0x1], 0 }
   0x7   :  { %16 = vsyncpa [#allocation5], 0 }
   0x8   :  { %18 = vsyncpa [#allocation5 + $0x1], 0 }
   0x9   :  { %19 = vsyncpa [#allocation8], 0 }
   0xa   :  { %21 = vsyncpa [#allocation8 + $0x1], 0  ;;  %s968_s24 = smov 0   ;;  %s970_s25 = smov 0  }
   0xb   :  { %s972_s26 = smov 0   ;;  %s974_s27 = smov 0  }
   0xc LB: > { %s989_s28 = sadd.s32 4294967295, %s920_s27   ;;  %s1205_s29 = sadd.s32 4294967294, %s920_s27   ;;  %s920_s27 = sphi %s974_s27, %s1229_s27   ;;  %s916_s26 = sphi %s972_s26, %s1228_s26   ;;  %s912_s25 = sphi %s970_s25, %s1227_s25   ;;  %s908_s24 = sphi %s968_s24, %s1226_s24  }
   0xd   : > { %s993_s30 = sadd.s32 1, %s920_s27   ;;  %s128_s8 = sadd.s32 1, %s916_s26 }
   0xe   : > { %s125_s9 = ssub.s32 %s920_s27, %s993_s30  ;;  %p138_p0 = scmp.ne.s32.totalorder %s916_s26, %s912_s25 }
   0xf   : > { %p126_p1 = scmp.eq.s32.totalorder %s125_s9, 0  ;;  %p139_p2 = scmp.eq.s32.totalorder %s989_s28, 1 }
  0x10   : > { %p144_p3 = scmp.ne.s32.totalorder %s912_s25, %s908_s24  ;;  %p145_p4 = scmp.eq.s32.totalorder %s1205_s29, 1 }
  0x11   : > { %s1006_s10 = scalar_select %p126_p1, %s916_s26, %s128_s8  }
  0x12   : > { %p1008_p5 = por %p139_p2, %p138_p0  ;;  %p1012_p6 = por %p145_p4, %p144_p3 }
  0x13   : > { %1213 = sst [smem:[#allocation12_spill]] %s1006_s10  ;;  %p685_p7 = scmp.ge.s32.totalorder %s920_s27, 1 }
  0x14   : > { %p263_p8 = scmp.lt.s32.totalorder %s920_s27, 3 }
  0x16   : > { %p264_p9 = pnand %p685_p7, %p263_p8 }
  0x17   : > { %s1216_s2 = sld [smem:[#allocation15_spill]] (!%p264_p9)  ;;  %p311_p10 = scmp.lt.s32.totalorder (!%p264_p9), %s989_s28, 1 }
  0x18   : > { %267 = sbr.rel (%p264_p9) target bundleno = 329 (0x149), region = 36  ;;  %s1217_s3 = sld [smem:[#allocation16_spill]] (!%p264_p9) }
  0x19   : > { %s1218_s0 = sld [smem:[#allocation13_spill]] (!%p264_p9)  ;;  %s1033_s9 = sand.u32 (!%p264_p9), 1, %s912_s25  }
  0x1a   : > { %s1219_s1 = sld [smem:[#allocation14_spill]] (!%p264_p9)  ;;  %s1037_s14 = sshll.u32 (!%p264_p9), %s989_s28, 4 }
  0x1b   : > { %s1206_s15 = scalar_lea.vmem (!%p264_p9), [#allocation4], %s1033_s9  ;;  %s1046_s19 = scalar_lea.hbm (!%p264_p9), %s1202_s5, %s1037_s14 }
  0x1c   : > { %s508_s16 = sshll.u32 (!%p264_p9), %s1206_s15, 4  ;;  %s292_s20 = scalar_lea.vmem (!%p264_p9), [#allocation2], %s1033_s9  ;;  %s1049_s16 = int_to_ptr.vmem [resolvable:$true] %s508_s16 }
  0x1d   : > { %vm336_vm0 = vcmask 1045504   ;;  %v922_v0 = vmov 0.0   ;;  %v773_v1 = vld [vmem:[%s1216_s2] sm:$0x3f]   ;;  %vm407_vm1 = vcmask 1041408   ;;  %vm923_vm2 = vmmov 0   ;;  %s1066_s15 = scalar_lea.hbm %s1203_s6, %s1037_s14 }
  0x1e   : > { %705 = vmatprep.subr.bf16.mxu0 %v922_v0  ;;  %711 = vmatprep.subr.bf16.mxu1 %v922_v0  ;;  %v402_v2 = vld [vmem:[%s1217_s3] sm:$0x3]  ;;  %v338_v4 = vsel %vm336_vm0, %v773_v1, 0  ;;  %s312_s17 = scalar_select %p311_p10, %s989_s28, 1  ;;  %vm332_vm3 = vcmask 97280   ;;  %vm403_vm4 = vcmask 31744  }
  0x1f   : > { %v409_v3 = vsel %vm407_vm1, %v402_v2, 0  ;;  %707 = vmatprep.mubr.msk.bf16.mxu0 %vm923_vm2, %v922_v0  ;;  %713 = vmatprep.mubr.msk.bf16.mxu1 %vm923_vm2, %v922_v0  ;;  %s1207_s22 = scalar_lea.vmem [#allocation6], %s1033_s9 }
  0x20   : > { %712 = vmatpush3.bf16.msra.mxu1 %v409_v3  ;;  %706 = vmatpush3.bf16.msra.mxu0 %v338_v4  ;;  %s699_s18 = sshll.u32 %s312_s17, 4  ;;  %s521_s23 = sshll.u32 %s1207_s22, 4  ;;  %s1073_s23 = int_to_ptr.vmem [resolvable:$true] %s521_s23 }
  0x21   : > { %s315_s21 = scalar_lea.vmem %s1218_s0, %s699_s18  ;;  %s320_s8 = scalar_lea.vmem %s1219_s1, %s699_s18 }
  0x22   : > { %v322_v5 = vld [vmem:[%s315_s21] sm:$0xff]  ;;  %v323_v6 = vld [vmem:[%s315_s21 + $0x8] sm:$0xff]  ;;  %s495_s21 = sshll.u32 %s292_s20, 4  ;;  %s1058_s18 = scalar_lea.hbm %s1201_s4, %s1037_s14  ;;  %s1060_s21 = int_to_ptr.vmem [resolvable:$true] %s495_s21 }
  0x23   : > { %v399_v7 = vld [vmem:[%s320_s8] sm:$0xff]  ;;  %v324_v8 = vpack.c.bf16 %v323_v6, %v322_v5  ;;  %v400_v9 = vld [vmem:[%s320_s8 + $0x8] sm:$0xff]  ;;  %s1208_s22 = scalar_lea.vmem [#allocation7], %s1033_s9  ;;  %s471_s8 = scalar_lea.sflag [#allocation3], %s1033_s9 }
  0x24   : > { %v401_v10 = vpack.c.bf16 %v400_v9, %v399_v7  ;;  %s1071_s0 = sshll.u32 %s1208_s22, 4  ;;  %s774_s17 = scalar_lea.vmem %s1060_s21, 16  ;;  %s1107_s0 = int_to_ptr.vmem [resolvable:$true] %s1071_s0 }
  0x25   : > { %708 = vmatmul.mubr.msk.bf16.vlgmr.msra.gmra.mxu0 %vm332_vm3, %v324_v8  ;;  %p775_p11 = scmp.ne.s32.totalorder %s1060_s21, %s774_s17  ;;  %s924_s1 = smov [#allocation2]  }
  0x26   : > { %714 = vmatmul.mubr.msk.bf16.vlgmr.msra.gmra.mxu1 %vm403_vm4, %v401_v10  ;;  %s778_s29 = sshll.u32 %s924_s1, 4  ;;  %s779_s29 = int_to_ptr.vmem [resolvable:$false] %s778_s29 }
  0x27   : > { %p776_p12 = pnand %p775_p11, %p1008_p5  ;;  %s780_s13 = scalar_lea.vmem %s779_s29, 32 }
  0x28   : > { %p781_p0 = scmp.lt.s32.totalorder %s1060_s21, %s779_s29  ;;  %p782_p1 = scmp.lt.s32.totalorder %s780_s13, %s774_s17 }
  0x29   : > { %p777_p13 = pneg %p776_p12 }
  0x2a   : > { %p783_p2 = por %p782_p1, %p781_p0 }
  0x2c   : > { %p784_p3 = pnand %p783_p2, %p777_p13 }
  0xe5   : > { %v374_v11 = vpop.f32.mrf.mxu0 }
  0xe6   : > { %v445_v12 = vpop.f32.mrf.mxu1  ;;  %v389_v16 = vmul.f32 %v374_v11, %v374_v11 }
  0xe7   : > { %v709_v13 = vpop.f32.mrf.mxu0  ;;  %v460_v20 = vmul.f32 %v445_v12, %v445_v12 }
  0xe8   : > { %v715_v14 = vpop.f32.mrf.mxu1 }
  0xe9   : > { %v377_v15 = vpop.f32.mrf.mxu0 }
  0xea   : > { %v381_v17 = vadd.f32 %v377_v15, %v374_v11  ;;  %v390_v18 = vmul.f32 %v377_v15, %v377_v15  ;;  %v448_v19 = vpop.f32.mrf.mxu1 }
  0xeb   : > { %v452_v21 = vadd.f32 %v448_v19, %v445_v12  ;;  %v461_v22 = vmul.f32 %v448_v19, %v448_v19  ;;  %v710_v23 = vpop.f32.mrf.mxu0 }
  0xec   : > { %v382_v24 = vrot.slane %v381_v17, 4  ;;  %v391_v25 = vadd.f32 %v390_v18, %v389_v16  ;;  %v716_v26 = vpop.f32.mrf.mxu1 }
  0xed   : > { %v453_v27 = vrot.slane %v452_v21, 4  ;;  %v462_v28 = vadd.f32 %v461_v22, %v460_v20 }
  0xee   : > { %v383_v29 = vadd.f32 %v382_v24, %v381_v17  ;;  %v392_v30 = vrot.slane %v391_v25, 4 }
  0xef   : > { %v454_v31 = vadd.f32 %v453_v27, %v452_v21  ;;  %v463_v32 = vrot.slane %v462_v28, 4 }
  0xf0   : > { %v384_v33 = vrot.slane %v383_v29, 2  ;;  %v393_v34 = vadd.f32 %v392_v30, %v391_v25 }
  0xf1   : > { %v455_v35 = vrot.slane %v454_v31, 2  ;;  %v464_v36 = vadd.f32 %v463_v32, %v462_v28 }
  0xf2   : > { %v385_v37 = vadd.f32 %v384_v33, %v383_v29  ;;  %v394_v38 = vrot.slane %v393_v34, 2 }
  0xf3   : > { %v456_v39 = vadd.f32 %v455_v35, %v454_v31  ;;  %v465_v40 = vrot.slane %v464_v36, 2 }
  0xf4   : > { %v395_v41 = vadd.f32 %v394_v38, %v393_v34  ;;  %v386_v42 = vrot.slane %v385_v37, 1 }
  0xf5   : > { %v457_v43 = vrot.slane %v456_v39, 1  ;;  %v466_v44 = vadd.f32 %v465_v40, %v464_v36 }
  0xf6   : > { %v396_v45 = vrot.slane %v395_v41, 1  ;;  %v387_v46 = vadd.f32 %v386_v42, %v385_v37 }
  0xf7   : > { %v458_v47 = vadd.f32 %v457_v43, %v456_v39  ;;  %v467_v48 = vrot.slane %v466_v44, 1 }
  0xf8   : > { %v397_v49 = vadd.f32 %v396_v45, %v395_v41  ;;  %388 = vst [vmem:[%s292_s20] sm:$0x1] %v387_v46 }
  0xf9   : > { %787 = shalt.err (!%p784_p3)
}
  0xfa   : > { %s788_s20 = scalar_lea.hbm %s1058_s18, 16  ;;  %s792_s1 = scalar_lea.hbm %s1201_s4, 32 }
  0xfb   : > { %p789_p4 = scmp.ne.s32.totalorder %s1058_s18, %s788_s20  ;;  %p793_p9 = scmp.lt.s32.totalorder %s1058_s18, %s1201_s4 }
  0xfc   : > { %p794_p10 = scmp.lt.s32.totalorder %s792_s1, %s788_s20 }
  0xfd   : > { %p790_p7 = pnand %p789_p4, %p1008_p5 }
  0xfe   : > { %p795_p11 = por %p794_p10, %p793_p9 }
  0xff   : > { %p791_p8 = pneg %p790_p7 }
 0x101   : > { %p796_p12 = pnand %p795_p11, %p791_p8 }
 0x103   : > { %799 = shalt.err (!%p796_p12)
}
 0x104   : > { %717 = dma.vmem_to_hbm [thread:$0]  (%p1008_p5), %s1060_s21, 16, %s1058_s18, %s471_s8   ;;  %v468_v50 = vadd.f32 %v467_v48, %v466_v44 }
 0x105   : > { %s1220_s2 = scalar_lea.vmem [#allocation6], %s1033_s9  ;;  %s1221_s3 = scalar_lea.vmem [#allocation4], %s1033_s9 }
 0x106   : > { %459 = vst [vmem:[%s1220_s2] sm:$0x1] %v458_v47  ;;  %398 = vst [vmem:[%s1221_s3] sm:$0x1] %v397_v49  ;;  %s1104_s17 = scalar_lea.hbm %s1204_s7, %s1037_s14  ;;  %s1222_s29 = sand.u32 1, %s989_s28  }
 0x107   : > { %s1111_s13 = scalar_lea.sflag [#allocation5], %s1222_s29  ;;  %s800_s20 = scalar_lea.vmem %s1049_s16, 16 }
 0x108   : > { %p801_p13 = scmp.ne.s32.totalorder %s1049_s16, %s800_s20  ;;  %s925_s21 = smov [#allocation4]  }
 0x109   : > { %s804_s18 = sshll.u32 %s925_s21, 4  ;;  %s805_s18 = int_to_ptr.vmem [resolvable:$false] %s804_s18 }
 0x10a   : > { %p802_p0 = pnand %p801_p13, %p1008_p5  ;;  %s806_s8 = scalar_lea.vmem %s805_s18, 32 }
 0x10b   : > { %p807_p2 = scmp.lt.s32.totalorder %s1049_s16, %s805_s18  ;;  %p808_p3 = scmp.lt.s32.totalorder %s806_s8, %s800_s20 }
 0x10c   : > { %p803_p1 = pneg %p802_p0 }
 0x10d   : > { %p809_p4 = por %p808_p3, %p807_p2 }
 0x10f   : > { %p810_p7 = pnand %p809_p4, %p803_p1 }
 0x111   : > { %813 = shalt.err (!%p810_p7)
}
 0x112   : > { %s814_s28 = scalar_lea.hbm %s1046_s19, 16  ;;  %s818_s2 = scalar_lea.hbm %s1202_s5, 32 }
 0x113   : > { %p815_p8 = scmp.ne.s32.totalorder %s1046_s19, %s814_s28  ;;  %p819_p11 = scmp.lt.s32.totalorder %s1046_s19, %s1202_s5 }
 0x114   : > { %p820_p12 = scmp.lt.s32.totalorder %s818_s2, %s814_s28 }
 0x115   : > { %p816_p9 = pnand %p815_p8, %p1008_p5 }
 0x116   : > { %p821_p13 = por %p820_p12, %p819_p11 }
 0x117   : > { %p817_p10 = pneg %p816_p9 }
 0x119   : > { %p822_p0 = pnand %p821_p13, %p817_p10 }
 0x11b   : > { %825 = shalt.err (!%p822_p0)
}
 0x11c   : > { %718 = dma.vmem_to_hbm [thread:$0]  (%p1008_p5), %s1049_s16, 16, %s1046_s19, %s1111_s13  }
 0x11d   : > { %s1223_s22 = scalar_lea.vmem [#allocation7], %s1033_s9  ;;  %s826_s29 = scalar_lea.vmem %s1073_s23, 16 }
 0x11e   : > { %469 = vst [vmem:[%s1223_s22] sm:$0x1] %v468_v50  ;;  %p827_p1 = scmp.ne.s32.totalorder %s1073_s23, %s826_s29  ;;  %s926_s20 = smov [#allocation6]  }
 0x11f   : > { %s830_s21 = sshll.u32 %s926_s20, 4  ;;  %s831_s21 = int_to_ptr.vmem [resolvable:$false] %s830_s21 }
 0x120   : > { %p828_p2 = pnand %p827_p1, %p1008_p5  ;;  %s832_s18 = scalar_lea.vmem %s831_s21, 32 }
 0x121   : > { %p833_p4 = scmp.lt.s32.totalorder %s1073_s23, %s831_s21  ;;  %p834_p7 = scmp.lt.s32.totalorder %s832_s18, %s826_s29 }
 0x122   : > { %p829_p3 = pneg %p828_p2 }
 0x123   : > { %p835_p8 = por %p834_p7, %p833_p4 }
 0x125   : > { %p836_p9 = pnand %p835_p8, %p829_p3 }
 0x127   : > { %839 = shalt.err (!%p836_p9)
}
 0x128   : > { %s840_s16 = scalar_lea.hbm %s1066_s15, 16  ;;  %s844_s28 = scalar_lea.hbm %s1203_s6, 32 }
 0x129   : > { %p841_p10 = scmp.ne.s32.totalorder %s1066_s15, %s840_s16  ;;  %p845_p13 = scmp.lt.s32.totalorder %s1066_s15, %s1203_s6 }
 0x12a   : > { %p846_p0 = scmp.lt.s32.totalorder %s844_s28, %s840_s16 }
 0x12b   : > { %p842_p11 = pnand %p841_p10, %p1008_p5 }
 0x12c   : > { %p847_p1 = por %p846_p0, %p845_p13 }
 0x12d   : > { %p843_p12 = pneg %p842_p11 }
 0x12f   : > { %p848_p2 = pnand %p847_p1, %p843_p12 }
 0x131   : > { %851 = shalt.err (!%p848_p2)
}
 0x132   : > { %719 = dma.vmem_to_hbm [thread:$0]  (%p1008_p5), %s1073_s23, 16, %s1066_s15, %s1111_s13  }
 0x133   : > { %s483_s2 = scalar_lea.sflag [#allocation8], %s1033_s9  ;;  %s852_s3 = scalar_lea.vmem %s1107_s0, 16 }
 0x134   : > { %p853_p3 = scmp.ne.s32.totalorder %s1107_s0, %s852_s3  ;;  %s927_s10 = smov [#allocation7]  }
 0x135   : > { %s856_s22 = sshll.u32 %s927_s10, 4  ;;  %s857_s22 = int_to_ptr.vmem [resolvable:$false] %s856_s22 }
 0x136   : > { %p854_p4 = pnand %p853_p3, %p1008_p5  ;;  %s858_s29 = scalar_lea.vmem %s857_s22, 32 }
 0x137   : > { %p859_p8 = scmp.lt.s32.totalorder %s1107_s0, %s857_s22  ;;  %p860_p9 = scmp.lt.s32.totalorder %s858_s29, %s852_s3 }
 0x138   : > { %p855_p7 = pneg %p854_p4 }
 0x139   : > { %p861_p10 = por %p860_p9, %p859_p8 }
 0x13b   : > { %p862_p11 = pnand %p861_p10, %p855_p7 }
 0x13d   : > { %865 = shalt.err (!%p862_p11)
}
 0x13e   : > { %s866_s15 = scalar_lea.hbm %s1104_s17, 16  ;;  %s870_s13 = scalar_lea.hbm %s1204_s7, 32 }
 0x13f   : > { %p867_p12 = scmp.ne.s32.totalorder %s1104_s17, %s866_s15  ;;  %p871_p1 = scmp.lt.s32.totalorder %s1104_s17, %s1204_s7 }
 0x140   : > { %p872_p2 = scmp.lt.s32.totalorder %s870_s13, %s866_s15 }
 0x141   : > { %p868_p13 = pnand %p867_p12, %p1008_p5 }
 0x142   : > { %p873_p3 = por %p872_p2, %p871_p1 }
 0x143   : > { %p869_p0 = pneg %p868_p13 }
 0x145   : > { %p874_p4 = pnand %p873_p3, %p869_p0 }
 0x147   : > { %877 = shalt.err (!%p874_p4)
}
 0x148   : > { %720 = dma.vmem_to_hbm [thread:$0]  (%p1008_p5), %s1107_s0, 16, %s1104_s17, %s483_s2  }
 0x149 PF: > { %p738_p7 = scmp.ge.s32.totalorder %s920_s27, 2  ;;  %s546_s18 = sand.u32 1, %s908_s24  }
 0x14a   : > { %s547_s16 = scalar_lea.sflag [#allocation3], %s546_s18 }
 0x14b   : > { %p726_p8 = pnand %p738_p7, %p1012_p6 }
 0x14d   : > { %p727_p9 = pneg %p726_p8 }
 0x14f   : > { %895 = dma.done.wait (%p727_p9), %s547_s16, 16  }
 0x150   : > { %897 = vsyncadd (%p727_p9), %s547_s16, 4294967280  ;;  %s1224_s19 = sadd.s32 4294967294, %s920_s27  }
 0x151   : > { %s554_s8 = sand.u32 1, %s1224_s19  }
 0x152   : > { %s555_s28 = scalar_lea.sflag [#allocation5], %s554_s8 }
 0x153   : > { %899 = dma.done.wait (%p727_p9), %s555_s28, 32  }
 0x154   : > { %901 = vsyncadd (%p727_p9), %s555_s28, 4294967264  ;;  %s571_s11 = scalar_lea.sflag [#allocation8], %s546_s18 }
 0x155   : > { %903 = dma.done.wait (%p727_p9), %s571_s11, 16  }
 0x156   : > { %905 = vsyncadd (%p727_p9), %s571_s11, 4294967280  ;;  %s1225_s0 = sld [smem:[#allocation12_spill]]  ;;  %p24_p5 = scmp.ge.s32.totalorder %s993_s30, 4  }
 0x157   : > { %s1226_s24 = smov %s912_s25  ;;  %s1227_s25 = smov %s916_s26 }
 0x158   : > { %s1229_s27 = smov %s993_s30  ;;  %26 = sbr.rel (!%p24_p5) target bundleno = 12 (0xc), region = 123 }
 0x15c   : > { %s1228_s26 = smov %s1225_s0 }
 0x15d   :  { %575 = vsyncpa [#allocation3], 1 }
 0x15e   :  { %577 = vsyncpa [#allocation3 + $0x1], 1 }
 0x15f   :  { %578 = vsyncpa [#allocation5], 1 }
 0x160   :  { %580 = vsyncpa [#allocation5 + $0x1], 1 }
 0x161   :  { %581 = vsyncpa [#allocation8], 1 }
 0x162   :  { %583 = vsyncpa [#allocation8 + $0x1], 1 }

</bundles_post_ra>
